<compile_context>
chip_gen: v7x
topology: tpu7x:2x2x1
jax: 0.10.0
libtpu: 0.0.40
codegen_flags: <defaults>
</compile_context>

<pallas_src>
import functools

import jax
import jax.numpy as jnp
from jax.experimental import pallas as pl
from jax.experimental.pallas import tpu as pltpu


def _conv_tanh_kernel(xrep_ref, w_ref, bias_ref, o_ref, *, W, Cin, Cout, KH, KW, L):
    """Fused (folded-BN1 -> conv -> folded-BN2 -> tanh) on one lane-packed block.

    xrep_ref : (Cin*Cout, L)         raw input, channel ci replicated Cout times in sublanes
    w_ref    : (KH*KW*Cin*Cout, L)   BN-folded weights * per-lane boundary mask (lane-broadcast)
    bias_ref : (Cout, L)             conv bias + BN2 shift + BN1-shift-through-conv (per position)
    o_ref    : (Cout, L)             output, lane-dense
    """
    x = xrep_ref[...]                                   # (Cin*Cout, L)
    acc = bias_ref[...]                                 # (Cout, L) f32, start from folded bias
    PH, PW = KH // 2, KW // 2

    for kh in range(KH):
        for kw in range(KW):
            t = kh * KW + kw
            d = (kh - PH) * W + (kw - PW)
            # out[p] needs x[p + d]; wrapped / cross-image lanes are zeroed by the
            # per-image boundary masks folded into w_ref.
            rolled = pltpu.roll(x, shift=(-d) % L, axis=1) if d != 0 else x
            for ci in range(Cin):
                wrow = (t * Cin + ci) * Cout
                acc = acc + (w_ref[wrow:wrow + Cout, :] *
                             rolled[ci * Cout:(ci + 1) * Cout, :])

    o_ref[...] = jnp.tanh(acc)


def bn_forward_folding_forward(x_nchw, params, *, eps=1e-5, images_per_step=None):
    gamma1, beta1, mean1, var1 = params["bn1"]
    w, b = params["conv"]
    gamma2, beta2, mean2, var2 = params["bn2"]

    N, Cin, H, W = x_nchw.shape
    Cout, _, KH, KW = w.shape
    HW = H * W

    # Images per grid step.  Default: whole batch in a single step (best on the
    # single-TC v5e/v6e).  On v7x use images_per_step = N // 2 so both cores work.
    B = N if images_per_step is None else images_per_step
    assert N % B == 0, "images_per_step must divide the batch"
    L = B * HW
    n_steps = N // B

    # ---- Inference-mode BN -> per-channel scale/shift (tiny plain-JAX glue).
    s1 = gamma1 / jnp.sqrt(var1 + eps)
    sh1 = beta1 - mean1 * s1
    s2 = gamma2 / jnp.sqrt(var2 + eps)
    sh2 = beta2 - mean2 * s2

    w_f = w.astype(jnp.float32) * s2[:, None, None, None]      # BN2 folded into weights
    b_f = (s2 * b + sh2).astype(jnp.float32)                   # BN2 + conv bias

    # ---- Conv zero-padding boundary masks (compile-time constants for fixed H,W,K),
    # tiled per image across the B lane-packed images.
    PH, PW = KH // 2, KW // 2
    rows = jnp.arange(HW, dtype=jnp.int32) // W
    cols = jnp.arange(HW, dtype=jnp.int32) % W
    mask_list = []
    for kh in range(KH):
        for kw in range(KW):
            dh, dw = kh - PH, kw - PW
            valid = ((rows + dh >= 0) & (rows + dh < H) &
                     (cols + dw >= 0) & (cols + dw < W))
            mask_list.append(valid.astype(jnp.float32))
    masks_hw = jnp.stack(mask_list)                             # (KH*KW, HW)
    masks_l = jnp.tile(masks_hw, (1, B))                        # (KH*KW, L)

    # ---- Data-path weights: BN2-fold * BN1-scale, boundary mask folded in,
    # pre-broadcast along lanes.  Row ((t*Cin + ci)*Cout + o) matches x_rep layout.
    w_eff = w_f * s1[None, :, None, None]                       # (Cout, Cin, KH, KW)
    w_tc = jnp.transpose(w_eff, (2, 3, 1, 0)).reshape(KH * KW, Cin, Cout)
    w_mb = (w_tc[:, :, :, None] * masks_l[:, None, None, :]).reshape(
        KH * KW * Cin * Cout, L).astype(jnp.float32)

    # ---- Bias map: conv bias + BN2 shift + BN1 shift pushed through the
    # zero-padded conv (position dependent, exact).
    w_sh = jnp.einsum('oikl,i->okl', w_f, sh1).reshape(Cout, KH * KW)
    bias_map = b_f[:, None] + w_sh @ masks_hw                   # (Cout, HW)
    bias_l = jnp.tile(bias_map, (1, B)).astype(jnp.float32)     # (Cout, L)

    # ---- Input: channels in sublanes, each channel replicated Cout times
    # (removes the in-kernel sublane broadcast); batch*spatial packed in lanes.
    x2 = x_nchw.astype(jnp.float32).reshape(N, Cin, HW)
    x2 = jnp.transpose(x2, (1, 0, 2)).reshape(Cin, N * HW)
    x_rep = jnp.repeat(x2, Cout, axis=0)                        # (Cin*Cout, N*HW)

    kernel = functools.partial(_conv_tanh_kernel, W=W, Cin=Cin, Cout=Cout,
                               KH=KH, KW=KW, L=L)

    out = pl.pallas_call(
        kernel,
        out_shape=jax.ShapeDtypeStruct((Cout, N * HW), jnp.float32),
        grid_spec=pltpu.PrefetchScalarGridSpec(
            num_scalar_prefetch=0,
            grid=(n_steps,),
            in_specs=[
                pl.BlockSpec((Cin * Cout, L), lambda g: (0, g)),            # x (per step)
                pl.BlockSpec((KH * KW * Cin * Cout, L), lambda g: (0, 0)),  # weights (const)
                pl.BlockSpec((Cout, L), lambda g: (0, 0)),                  # bias map (const)
            ],
            out_specs=pl.BlockSpec((Cout, L), lambda g: (0, g)),
        ),
        # Steps are independent -> "parallel" lets v7x shard them across its two
        # TensorCores; neutral on single-TC v5e/v6e.
        compiler_params=pltpu.CompilerParams(
            dimension_semantics=("parallel",)),
    )(x_rep, w_mb, bias_l)

    # (Cout, N*HW) lane-dense -> NCHW
    return jnp.transpose(out.reshape(Cout, N, H, W), (1, 0, 2, 3))


def _reference(x_nchw, params, *, eps=1e-5):
    """Pure-JAX reference (NCHW, XLA conv) for validation."""
    gamma1, beta1, mean1, var1 = params["bn1"]
    w, b = params["conv"]
    gamma2, beta2, mean2, var2 = params["bn2"]

    def bn(x, g, bt, m, v):
        return (x - m[None, :, None, None]) / jnp.sqrt(v + eps)[None, :, None, None] \
            * g[None, :, None, None] + bt[None, :, None, None]

    x = bn(x_nchw, gamma1, beta1, mean1, var1)
    y = jax.lax.conv_general_dilated(
        x, w, window_strides=(1, 1), padding="SAME",
        dimension_numbers=("NCHW", "OIHW", "NCHW"),
        precision=jax.lax.Precision.HIGHEST)
    y = y + b[None, :, None, None]
    y = bn(y, gamma2, beta2, mean2, var2)
    return jnp.tanh(y)


def init_params(key, *, Cin=3, Cout=8, K=3):
    ks = jax.random.split(key, 10)
    # BatchNorm2d(3): uniform inits as in the PyTorch module.
    bn1 = (jax.random.uniform(ks[0], (Cin,), jnp.float32, 0.02, 1.05),   # weight
           jax.random.uniform(ks[1], (Cin,), jnp.float32, -1.2, 1.05),   # bias
           jax.random.uniform(ks[2], (Cin,), jnp.float32, -1.2, 1.05),   # running_mean
           jax.random.uniform(ks[3], (Cin,), jnp.float32, 0.02, 1.05))   # running_var
    # Conv2d(3, 8, 3, padding=1): PyTorch-style uniform(-1/sqrt(fan_in), ...)
    bound = float(1.0 / (Cin * K * K) ** 0.5)
    conv_w = jax.random.uniform(ks[4], (Cout, Cin, K, K), jnp.float32, -bound, bound)
    conv_b = jax.random.uniform(ks[5], (Cout,), jnp.float32, -bound, bound)
    # BatchNorm2d(out_channels) (add_bn=True branch), same uniform inits.
    bn2 = (jax.random.uniform(ks[6], (Cout,), jnp.float32, 0.02, 1.05),
           jax.random.uniform(ks[7], (Cout,), jnp.float32, -1.2, 1.05),
           jax.random.uniform(ks[8], (Cout,), jnp.float32, -1.2, 1.05),
           jax.random.uniform(ks[9], (Cout,), jnp.float32, 0.02, 1.05))
    return {
        "bn1": (bn1[0], bn1[1], bn1[2], bn1[3]),   # gamma, beta, mean, var
        "conv": (conv_w, conv_b),
        "bn2": (bn2[0], bn2[1], bn2[2], bn2[3]),
    }


if __name__ == "__main__":
    key = jax.random.PRNGKey(0)
    k_x, k_p = jax.random.split(key)

    N, Cin, H, W = 2, 3, 16, 16
    x = jax.random.normal(k_x, (N, Cin, H, W), jnp.float32)

    params = init_params(k_p, Cin=Cin, Cout=8, K=3)

    out = bn_forward_folding_forward(x, params)   # whole batch in a single grid step
    out = jax.block_until_ready(out)

    ref = _reference(x, params)
    assert out.shape == ref.shape == (N, 8, H, W), (out.shape, ref.shape)
    max_err = float(jnp.max(jnp.abs(out - ref)))
    if max_err > 2e-4:
        raise AssertionError(f"kernel mismatch vs reference, max_err={max_err}")

    print("KERNEL_OK")
</pallas_src>

<mosaic_0001>
module attributes {stable_mosaic.version = 11 : i64} {
  func.func @_conv_tanh_kernel(%arg0: i32, %arg1: memref<24x512xf32, #tpu.memory_space<vmem>>, %arg2: memref<216x512xf32, #tpu.memory_space<vmem>>, %arg3: memref<8x512xf32, #tpu.memory_space<vmem>>, %arg4: memref<8x512xf32, #tpu.memory_space<vmem>>) attributes {dimension_semantics = [#tpu.dimension_semantics<parallel>], iteration_bounds = array<i64: 1>, scalar_prefetch = 0 : i64, scratch_operands = 0 : i64, tpu.core_type = #tpu.core_type<tc>, window_params = [{transform_indices = @transform_0, window_bounds = array<i64: 24, 512>}, {pipeline_mode = #tpu.pipeline_mode<synchronous>, transform_indices = @transform_1, window_bounds = array<i64: 216, 512>}, {pipeline_mode = #tpu.pipeline_mode<synchronous>, transform_indices = @transform_2, window_bounds = array<i64: 8, 512>}, {transform_indices = @transform_3, window_bounds = array<i64: 8, 512>}]} {
    %c0 = arith.constant 0 : index
    %c0_0 = arith.constant 0 : index
    %0 = vector.load %arg1[%c0, %c0_0] : memref<24x512xf32, #tpu.memory_space<vmem>>, vector<24x512xf32>
    %c0_1 = arith.constant 0 : index
    %c0_2 = arith.constant 0 : index
    %1 = vector.load %arg3[%c0_1, %c0_2] : memref<8x512xf32, #tpu.memory_space<vmem>>, vector<8x512xf32>
    %c17_i32 = arith.constant 17 : i32
    %2 = tpu.dynamic_rotate %0 by %c17_i32 dim 1 : vector<24x512xf32>, i32 -> vector<24x512xf32>
    %c0_3 = arith.constant 0 : index
    %c0_4 = arith.constant 0 : index
    %3 = vector.load %arg2[%c0_3, %c0_4] : memref<216x512xf32, #tpu.memory_space<vmem>>, vector<8x512xf32>
    %4 = vector.extract_strided_slice %2 {offsets = [0, 0], sizes = [8, 512], strides = [1, 1]} : vector<24x512xf32> to vector<8x512xf32>
    %5 = arith.mulf %3, %4 : vector<8x512xf32>
    %6 = arith.addf %1, %5 : vector<8x512xf32>
    %c8 = arith.constant 8 : index
    %c0_5 = arith.constant 0 : index
    %7 = vector.load %arg2[%c8, %c0_5] : memref<216x512xf32, #tpu.memory_space<vmem>>, vector<8x512xf32>
    %8 = vector.extract_strided_slice %2 {offsets = [8, 0], sizes = [8, 512], strides = [1, 1]} : vector<24x512xf32> to vector<8x512xf32>
    %9 = arith.mulf %7, %8 : vector<8x512xf32>
    %10 = arith.addf %6, %9 : vector<8x512xf32>
    %c16 = arith.constant 16 : index
    %c0_6 = arith.constant 0 : index
    %11 = vector.load %arg2[%c16, %c0_6] : memref<216x512xf32, #tpu.memory_space<vmem>>, vector<8x512xf32>
    %12 = vector.extract_strided_slice %2 {offsets = [16, 0], sizes = [8, 512], strides = [1, 1]} : vector<24x512xf32> to vector<8x512xf32>
    %13 = arith.mulf %11, %12 : vector<8x512xf32>
    %14 = arith.addf %10, %13 : vector<8x512xf32>
    %c16_i32 = arith.constant 16 : i32
    %15 = tpu.dynamic_rotate %0 by %c16_i32 dim 1 : vector<24x512xf32>, i32 -> vector<24x512xf32>
    %c24 = arith.constant 24 : index
    %c0_7 = arith.constant 0 : index
    %16 = vector.load %arg2[%c24, %c0_7] : memref<216x512xf32, #tpu.memory_space<vmem>>, vector<8x512xf32>
    %17 = vector.extract_strided_slice %15 {offsets = [0, 0], sizes = [8, 512], strides = [1, 1]} : vector<24x512xf32> to vector<8x512xf32>
    %18 = arith.mulf %16, %17 : vector<8x512xf32>
    %19 = arith.addf %14, %18 : vector<8x512xf32>
    %c32 = arith.constant 32 : index
    %c0_8 = arith.constant 0 : index
    %20 = vector.load %arg2[%c32, %c0_8] : memref<216x512xf32, #tpu.memory_space<vmem>>, vector<8x512xf32>
    %21 = vector.extract_strided_slice %15 {offsets = [8, 0], sizes = [8, 512], strides = [1, 1]} : vector<24x512xf32> to vector<8x512xf32>
    %22 = arith.mulf %20, %21 : vector<8x512xf32>
    %23 = arith.addf %19, %22 : vector<8x512xf32>
    %c40 = arith.constant 40 : index
    %c0_9 = arith.constant 0 : index
    %24 = vector.load %arg2[%c40, %c0_9] : memref<216x512xf32, #tpu.memory_space<vmem>>, vector<8x512xf32>
    %25 = vector.extract_strided_slice %15 {offsets = [16, 0], sizes = [8, 512], strides = [1, 1]} : vector<24x512xf32> to vector<8x512xf32>
    %26 = arith.mulf %24, %25 : vector<8x512xf32>
    %27 = arith.addf %23, %26 : vector<8x512xf32>
    %c15_i32 = arith.constant 15 : i32
    %28 = tpu.dynamic_rotate %0 by %c15_i32 dim 1 : vector<24x512xf32>, i32 -> vector<24x512xf32>
    %c48 = arith.constant 48 : index
    %c0_10 = arith.constant 0 : index
    %29 = vector.load %arg2[%c48, %c0_10] : memref<216x512xf32, #tpu.memory_space<vmem>>, vector<8x512xf32>
    %30 = vector.extract_strided_slice %28 {offsets = [0, 0], sizes = [8, 512], strides = [1, 1]} : vector<24x512xf32> to vector<8x512xf32>
    %31 = arith.mulf %29, %30 : vector<8x512xf32>
    %32 = arith.addf %27, %31 : vector<8x512xf32>
    %c56 = arith.constant 56 : index
    %c0_11 = arith.constant 0 : index
    %33 = vector.load %arg2[%c56, %c0_11] : memref<216x512xf32, #tpu.memory_space<vmem>>, vector<8x512xf32>
    %34 = vector.extract_strided_slice %28 {offsets = [8, 0], sizes = [8, 512], strides = [1, 1]} : vector<24x512xf32> to vector<8x512xf32>
    %35 = arith.mulf %33, %34 : vector<8x512xf32>
    %36 = arith.addf %32, %35 : vector<8x512xf32>
    %c64 = arith.constant 64 : index
    %c0_12 = arith.constant 0 : index
    %37 = vector.load %arg2[%c64, %c0_12] : memref<216x512xf32, #tpu.memory_space<vmem>>, vector<8x512xf32>
    %38 = vector.extract_strided_slice %28 {offsets = [16, 0], sizes = [8, 512], strides = [1, 1]} : vector<24x512xf32> to vector<8x512xf32>
    %39 = arith.mulf %37, %38 : vector<8x512xf32>
    %40 = arith.addf %36, %39 : vector<8x512xf32>
    %c1_i32 = arith.constant 1 : i32
    %41 = tpu.dynamic_rotate %0 by %c1_i32 dim 1 : vector<24x512xf32>, i32 -> vector<24x512xf32>
    %c72 = arith.constant 72 : index
    %c0_13 = arith.constant 0 : index
    %42 = vector.load %arg2[%c72, %c0_13] : memref<216x512xf32, #tpu.memory_space<vmem>>, vector<8x512xf32>
    %43 = vector.extract_strided_slice %41 {offsets = [0, 0], sizes = [8, 512], strides = [1, 1]} : vector<24x512xf32> to vector<8x512xf32>
    %44 = arith.mulf %42, %43 : vector<8x512xf32>
    %45 = arith.addf %40, %44 : vector<8x512xf32>
    %c80 = arith.constant 80 : index
    %c0_14 = arith.constant 0 : index
    %46 = vector.load %arg2[%c80, %c0_14] : memref<216x512xf32, #tpu.memory_space<vmem>>, vector<8x512xf32>
    %47 = vector.extract_strided_slice %41 {offsets = [8, 0], sizes = [8, 512], strides = [1, 1]} : vector<24x512xf32> to vector<8x512xf32>
    %48 = arith.mulf %46, %47 : vector<8x512xf32>
    %49 = arith.addf %45, %48 : vector<8x512xf32>
    %c88 = arith.constant 88 : index
    %c0_15 = arith.constant 0 : index
    %50 = vector.load %arg2[%c88, %c0_15] : memref<216x512xf32, #tpu.memory_space<vmem>>, vector<8x512xf32>
    %51 = vector.extract_strided_slice %41 {offsets = [16, 0], sizes = [8, 512], strides = [1, 1]} : vector<24x512xf32> to vector<8x512xf32>
    %52 = arith.mulf %50, %51 : vector<8x512xf32>
    %53 = arith.addf %49, %52 : vector<8x512xf32>
    %c96 = arith.constant 96 : index
    %c0_16 = arith.constant 0 : index
    %54 = vector.load %arg2[%c96, %c0_16] : memref<216x512xf32, #tpu.memory_space<vmem>>, vector<8x512xf32>
    %55 = vector.extract_strided_slice %0 {offsets = [0, 0], sizes = [8, 512], strides = [1, 1]} : vector<24x512xf32> to vector<8x512xf32>
    %56 = arith.mulf %54, %55 : vector<8x512xf32>
    %57 = arith.addf %53, %56 : vector<8x512xf32>
    %c104 = arith.constant 104 : index
    %c0_17 = arith.constant 0 : index
    %58 = vector.load %arg2[%c104, %c0_17] : memref<216x512xf32, #tpu.memory_space<vmem>>, vector<8x512xf32>
    %59 = vector.extract_strided_slice %0 {offsets = [8, 0], sizes = [8, 512], strides = [1, 1]} : vector<24x512xf32> to vector<8x512xf32>
    %60 = arith.mulf %58, %59 : vector<8x512xf32>
    %61 = arith.addf %57, %60 : vector<8x512xf32>
    %c112 = arith.constant 112 : index
    %c0_18 = arith.constant 0 : index
    %62 = vector.load %arg2[%c112, %c0_18] : memref<216x512xf32, #tpu.memory_space<vmem>>, vector<8x512xf32>
    %63 = vector.extract_strided_slice %0 {offsets = [16, 0], sizes = [8, 512], strides = [1, 1]} : vector<24x512xf32> to vector<8x512xf32>
    %64 = arith.mulf %62, %63 : vector<8x512xf32>
    %65 = arith.addf %61, %64 : vector<8x512xf32>
    %c511_i32 = arith.constant 511 : i32
    %66 = tpu.dynamic_rotate %0 by %c511_i32 dim 1 : vector<24x512xf32>, i32 -> vector<24x512xf32>
    %c120 = arith.constant 120 : index
    %c0_19 = arith.constant 0 : index
    %67 = vector.load %arg2[%c120, %c0_19] : memref<216x512xf32, #tpu.memory_space<vmem>>, vector<8x512xf32>
    %68 = vector.extract_strided_slice %66 {offsets = [0, 0], sizes = [8, 512], strides = [1, 1]} : vector<24x512xf32> to vector<8x512xf32>
    %69 = arith.mulf %67, %68 : vector<8x512xf32>
    %70 = arith.addf %65, %69 : vector<8x512xf32>
    %c128 = arith.constant 128 : index
    %c0_20 = arith.constant 0 : index
    %71 = vector.load %arg2[%c128, %c0_20] : memref<216x512xf32, #tpu.memory_space<vmem>>, vector<8x512xf32>
    %72 = vector.extract_strided_slice %66 {offsets = [8, 0], sizes = [8, 512], strides = [1, 1]} : vector<24x512xf32> to vector<8x512xf32>
    %73 = arith.mulf %71, %72 : vector<8x512xf32>
    %74 = arith.addf %70, %73 : vector<8x512xf32>
    %c136 = arith.constant 136 : index
    %c0_21 = arith.constant 0 : index
    %75 = vector.load %arg2[%c136, %c0_21] : memref<216x512xf32, #tpu.memory_space<vmem>>, vector<8x512xf32>
    %76 = vector.extract_strided_slice %66 {offsets = [16, 0], sizes = [8, 512], strides = [1, 1]} : vector<24x512xf32> to vector<8x512xf32>
    %77 = arith.mulf %75, %76 : vector<8x512xf32>
    %78 = arith.addf %74, %77 : vector<8x512xf32>
    %c497_i32 = arith.constant 497 : i32
    %79 = tpu.dynamic_rotate %0 by %c497_i32 dim 1 : vector<24x512xf32>, i32 -> vector<24x512xf32>
    %c144 = arith.constant 144 : index
    %c0_22 = arith.constant 0 : index
    %80 = vector.load %arg2[%c144, %c0_22] : memref<216x512xf32, #tpu.memory_space<vmem>>, vector<8x512xf32>
    %81 = vector.extract_strided_slice %79 {offsets = [0, 0], sizes = [8, 512], strides = [1, 1]} : vector<24x512xf32> to vector<8x512xf32>
    %82 = arith.mulf %80, %81 : vector<8x512xf32>
    %83 = arith.addf %78, %82 : vector<8x512xf32>
    %c152 = arith.constant 152 : index
    %c0_23 = arith.constant 0 : index
    %84 = vector.load %arg2[%c152, %c0_23] : memref<216x512xf32, #tpu.memory_space<vmem>>, vector<8x512xf32>
    %85 = vector.extract_strided_slice %79 {offsets = [8, 0], sizes = [8, 512], strides = [1, 1]} : vector<24x512xf32> to vector<8x512xf32>
    %86 = arith.mulf %84, %85 : vector<8x512xf32>
    %87 = arith.addf %83, %86 : vector<8x512xf32>
    %c160 = arith.constant 160 : index
    %c0_24 = arith.constant 0 : index
    %88 = vector.load %arg2[%c160, %c0_24] : memref<216x512xf32, #tpu.memory_space<vmem>>, vector<8x512xf32>
    %89 = vector.extract_strided_slice %79 {offsets = [16, 0], sizes = [8, 512], strides = [1, 1]} : vector<24x512xf32> to vector<8x512xf32>
    %90 = arith.mulf %88, %89 : vector<8x512xf32>
    %91 = arith.addf %87, %90 : vector<8x512xf32>
    %c496_i32 = arith.constant 496 : i32
    %92 = tpu.dynamic_rotate %0 by %c496_i32 dim 1 : vector<24x512xf32>, i32 -> vector<24x512xf32>
    %c168 = arith.constant 168 : index
    %c0_25 = arith.constant 0 : index
    %93 = vector.load %arg2[%c168, %c0_25] : memref<216x512xf32, #tpu.memory_space<vmem>>, vector<8x512xf32>
    %94 = vector.extract_strided_slice %92 {offsets = [0, 0], sizes = [8, 512], strides = [1, 1]} : vector<24x512xf32> to vector<8x512xf32>
    %95 = arith.mulf %93, %94 : vector<8x512xf32>
    %96 = arith.addf %91, %95 : vector<8x512xf32>
    %c176 = arith.constant 176 : index
    %c0_26 = arith.constant 0 : index
    %97 = vector.load %arg2[%c176, %c0_26] : memref<216x512xf32, #tpu.memory_space<vmem>>, vector<8x512xf32>
    %98 = vector.extract_strided_slice %92 {offsets = [8, 0], sizes = [8, 512], strides = [1, 1]} : vector<24x512xf32> to vector<8x512xf32>
    %99 = arith.mulf %97, %98 : vector<8x512xf32>
    %100 = arith.addf %96, %99 : vector<8x512xf32>
    %c184 = arith.constant 184 : index
    %c0_27 = arith.constant 0 : index
    %101 = vector.load %arg2[%c184, %c0_27] : memref<216x512xf32, #tpu.memory_space<vmem>>, vector<8x512xf32>
    %102 = vector.extract_strided_slice %92 {offsets = [16, 0], sizes = [8, 512], strides = [1, 1]} : vector<24x512xf32> to vector<8x512xf32>
    %103 = arith.mulf %101, %102 : vector<8x512xf32>
    %104 = arith.addf %100, %103 : vector<8x512xf32>
    %c495_i32 = arith.constant 495 : i32
    %105 = tpu.dynamic_rotate %0 by %c495_i32 dim 1 : vector<24x512xf32>, i32 -> vector<24x512xf32>
    %c192 = arith.constant 192 : index
    %c0_28 = arith.constant 0 : index
    %106 = vector.load %arg2[%c192, %c0_28] : memref<216x512xf32, #tpu.memory_space<vmem>>, vector<8x512xf32>
    %107 = vector.extract_strided_slice %105 {offsets = [0, 0], sizes = [8, 512], strides = [1, 1]} : vector<24x512xf32> to vector<8x512xf32>
    %108 = arith.mulf %106, %107 : vector<8x512xf32>
    %109 = arith.addf %104, %108 : vector<8x512xf32>
    %c200 = arith.constant 200 : index
    %c0_29 = arith.constant 0 : index
    %110 = vector.load %arg2[%c200, %c0_29] : memref<216x512xf32, #tpu.memory_space<vmem>>, vector<8x512xf32>
    %111 = vector.extract_strided_slice %105 {offsets = [8, 0], sizes = [8, 512], strides = [1, 1]} : vector<24x512xf32> to vector<8x512xf32>
    %112 = arith.mulf %110, %111 : vector<8x512xf32>
    %113 = arith.addf %109, %112 : vector<8x512xf32>
    %c208 = arith.constant 208 : index
    %c0_30 = arith.constant 0 : index
    %114 = vector.load %arg2[%c208, %c0_30] : memref<216x512xf32, #tpu.memory_space<vmem>>, vector<8x512xf32>
    %115 = vector.extract_strided_slice %105 {offsets = [16, 0], sizes = [8, 512], strides = [1, 1]} : vector<24x512xf32> to vector<8x512xf32>
    %116 = arith.mulf %114, %115 : vector<8x512xf32>
    %117 = arith.addf %113, %116 : vector<8x512xf32>
    %118 = math.tanh %117 : vector<8x512xf32>
    %c0_31 = arith.constant 0 : index
    %c0_32 = arith.constant 0 : index
    %119 = vector.load %arg4[%c0_31, %c0_32] : memref<8x512xf32, #tpu.memory_space<vmem>>, vector<8x512xf32>
    tpu.vector_store %arg4[%c0_31, %c0_32], %118 {strides = array<i32>} : memref<8x512xf32, #tpu.memory_space<vmem>>, vector<8x512xf32>,
    return
  }
  func.func @transform_0(%arg0: i32) -> (i32, i32) {
    %c0_i32 = arith.constant 0 : i32
    %c0_i32_0 = arith.constant 0 : i32
    return %c0_i32, %arg0 : i32, i32
  }
  func.func @transform_1(%arg0: i32) -> (i32, i32) {
    %c0_i32 = arith.constant 0 : i32
    %c0_i32_0 = arith.constant 0 : i32
    %c0_i32_1 = arith.constant 0 : i32
    return %c0_i32, %c0_i32_0 : i32, i32
  }
  func.func @transform_2(%arg0: i32) -> (i32, i32) {
    %c0_i32 = arith.constant 0 : i32
    %c0_i32_0 = arith.constant 0 : i32
    %c0_i32_1 = arith.constant 0 : i32
    return %c0_i32, %c0_i32_0 : i32, i32
  }
  func.func @transform_3(%arg0: i32) -> (i32, i32) {
    %c0_i32 = arith.constant 0 : i32
    %c0_i32_0 = arith.constant 0 : i32
    return %c0_i32, %arg0 : i32, i32
  }
}

</mosaic_0001>

<bundles_post_ra>
// kernel: tpu_custom_call.1
= control target key start
LH: loop header
LB: loop body
LE: loop exit
PB: predicated region body
PF: predicated region fallthrough
CT: control target
= control target key end

     0   :  { %8 = vsyncpa [#allocation3], 0  ;;  %s1389_s0 = inlined_call_operand.hbm [shape: f32[24,512], index: 0, kind: input, shape index: {}]   ;;  %s1390_s1 = inlined_call_operand.hbm [shape: f32[216,512], index: 1, kind: input, shape index: {}]   ;;  %s1391_s2 = inlined_call_operand.hbm [shape: f32[8,512], index: 2, kind: input, shape index: {}]   ;;  %s1392_s3 = inlined_call_operand.hbm [shape: f32[8,512], index: 3, kind: output, shape index: {}]  }
   0x1   :  { %9 = vsyncpa [#allocation6], 0 }
   0x2   :  { %10 = vsyncpa [#allocation4], 0  ;;  %s832_s12 = smov [#allocation5]   ;;  %s833_s14 = smov [#allocation2]  }
   0x3   :  { %s28_s13 = sshll.u32 %s832_s12, 4  ;;  %s16_s15 = sshll.u32 %s833_s14, 4  ;;  %s29_s13 = int_to_ptr.vmem [resolvable:$true] %s28_s13  ;;  %s866_s15 = int_to_ptr.vmem [resolvable:$true] %s16_s15 }
   0x4   :  { %s738_s18 = scalar_lea.hbm %s1390_s1, 13824 }
   0x5   :  { %p739_p0 = scmp.ne.s32.totalorder %s1390_s1, %s738_s18  ;;  %p742_p1 = scmp.lt.u32.totalorder %s738_s18, %s1390_s1 }
   0x7   :  { %p744_p2 = pnand %p742_p1, %p739_p0 }
   0x9   :  { %747 = shalt.err (!%p744_p2)
}
   0xa   :  { %s748_s23 = scalar_lea.vmem %s29_s13, 13824  ;;  %p753_p4 = scmp.lt.s32.totalorder %s29_s13, %s29_s13 }
   0xb   :  { %p749_p3 = scmp.ne.s32.totalorder %s29_s13, %s748_s23  ;;  %p754_p5 = scmp.lt.s32.totalorder %s748_s23, %s748_s23 }
   0xd   :  { %p755_p6 = por %p754_p5, %p753_p4 }
   0xf   :  { %p756_p7 = pnand %p755_p6, %p749_p3 }
  0x11   :  { %759 = shalt.err (!%p756_p7)
}
  0x12   :  { %s834_s24 = smov 512   ;;  %s835_s25 = smov 32  }
  0x13   :  { %34 = dma.hbm_to_vmem [thread:$0]  %s1390_s1, 13824, %s29_s13, [#allocation6], %s834_s24, %s834_s24, %s835_s25  }
  0x14   :  { %s760_s30 = scalar_lea.hbm %s1389_s0, 1536 }
  0x15   :  { %p761_p8 = scmp.ne.s32.totalorder %s1389_s0, %s760_s30  ;;  %p764_p9 = scmp.lt.u32.totalorder %s760_s30, %s1389_s0 }
  0x17   :  { %p766_p10 = pnand %p764_p9, %p761_p8 }
  0x19   :  { %769 = shalt.err (!%p766_p10)
}
  0x1a   :  { %s770_s8 = scalar_lea.vmem %s866_s15, 1536  ;;  %p775_p12 = scmp.lt.s32.totalorder %s866_s15, %s866_s15 }
  0x1b   :  { %p771_p11 = scmp.ne.s32.totalorder %s866_s15, %s770_s8  ;;  %p776_p13 = scmp.lt.s32.totalorder %s770_s8, %s770_s8 }
  0x1d   :  { %p777_p0 = por %p776_p13, %p775_p12 }
  0x1f   :  { %p778_p1 = pnand %p777_p0, %p771_p11 }
  0x21   :  { %781 = shalt.err (!%p778_p1)
}
  0x22   :  { %22 = dma.hbm_to_vmem [thread:$0]  %s1389_s0, 1536, %s866_s15, [#allocation3], %s834_s24, %s834_s24, %s835_s25  }
  0x23   :  { %s836_s10 = smov [#allocation7]   ;;  %s782_s14 = scalar_lea.hbm %s1391_s2, 512 }
  0x24   :  { %s41_s11 = sshll.u32 %s836_s10, 4  ;;  %p783_p2 = scmp.ne.s32.totalorder %s1391_s2, %s782_s14  ;;  %s42_s11 = int_to_ptr.vmem [resolvable:$true] %s41_s11 }
  0x25   :  { %p786_p3 = scmp.lt.u32.totalorder %s782_s14, %s1391_s2 }
  0x27   :  { %p788_p4 = pnand %p786_p3, %p783_p2 }
  0x29   :  { %791 = shalt.err (!%p788_p4)
}
  0x2a   :  { %s792_s20 = scalar_lea.vmem %s42_s11, 512  ;;  %p797_p6 = scmp.lt.s32.totalorder %s42_s11, %s42_s11 }
  0x2b   :  { %p793_p5 = scmp.ne.s32.totalorder %s42_s11, %s792_s20  ;;  %p798_p7 = scmp.lt.s32.totalorder %s792_s20, %s792_s20 }
  0x2d   :  { %p799_p8 = por %p798_p7, %p797_p6 }
  0x2f   :  { %p800_p9 = pnand %p799_p8, %p793_p5 }
  0x31   :  { %803 = shalt.err (!%p800_p9)
}
  0x32   :  { %44 = dma.hbm_to_vmem [thread:$0]  %s1391_s2, 512, %s42_s11, [#allocation6]  }
  0x33   :  { %826 = dma.done.wait [#allocation3], 1536  }
  0x34   :  { %827 = vsyncadd [#allocation3], 4294965760 }
  0x35   :  { %828 = dma.done.wait [#allocation6], 14336  }
  0x36   :  { %829 = vsyncadd [#allocation6], 4294952960  ;;  %v909_v0 = vld [vmem:[#allocation2 + $0x40] sm:$0xff]  ;;  %s837_s21 = smov 17   ;;  %v915_v2 = vld [vmem:[#allocation2 + $0x8] sm:$0xff]  ;;  %s838_s2 = smov 16   ;;  %v94_v12 = vlaneseq }
  0x37   :  { %v911_v1 = vld [vmem:[#allocation2] sm:$0xff]  ;;  %74 = vrot.lane.b32.xlu1 %v909_v0, %s837_s21  ;;  %v921_v4 = vld [vmem:[#allocation2 + $0x48] sm:$0xff]  ;;  %v927_v6 = vld [vmem:[#allocation2 + $0x30] sm:$0xff]  ;;  %s839_s22 = smov 15   ;;  %s840_s23 = smov 1  }
  0x38   :  { %70 = vrot.lane.b32.xlu0 %v911_v1, %s837_s21  ;;  %v917_v3 = vld [vmem:[#allocation2 + $0x20] sm:$0xff]  ;;  %v923_v5 = vld [vmem:[#allocation2 + $0x28] sm:$0xff]  ;;  %v929_v7 = vld [vmem:[#allocation2 + $0x10] sm:$0xff]  ;;  %s841_s24 = smov 127   ;;  %v991_v13 = vand.u32 127, %v94_v12  ;;  %s842_s25 = smov 113  }
  0x39   :  { %v933_v8 = vld [vmem:[#allocation2 + $0x18] sm:$0xff]  ;;  %v935_v9 = vld [vmem:[#allocation2 + $0x50] sm:$0xff]  ;;  %v110_v16 = vld [vmem:[#allocation5 + $0x8] sm:$0xff]  ;;  %s843_s26 = smov 112   ;;  %s844_s27 = smov 111  }
  0x3a   :  { %v939_v10 = vld [vmem:[#allocation2 + $0x58] sm:$0xff]  ;;  %vm96_vm0 = vcmp.lt.s32.totalorder %v991_v13, 17  ;;  %v67_v21 = vld [vmem:[#allocation7 + $0x8] sm:$0xff]  ;;  %v111_v30 = vld [vmem:[#allocation5 + $0x10] sm:$0xff]  ;;  %vm169_vm1 = vcmp.lt.s32.totalorder %v991_v13, 16  ;;  %vm242_vm2 = vcmp.lt.s32.totalorder %v991_v13, 15 }
  0x3b   :  { %76 = vrot.lane.b32.xlu1 %v915_v2, %s837_s21  ;;  %v941_v11 = vld [vmem:[#allocation2 + $0x38] sm:$0xff]  ;;  %v122_v22 = vld [vmem:[#allocation5 + $0x28] sm:$0xff]  ;;  %v123_v35 = vld [vmem:[#allocation5 + $0x30] sm:$0xff]  ;;  %vm315_vm3 = vcmp.lt.s32.totalorder %v991_v13, 1  ;;  %vm424_vm4 = vcmp.lt.s32.totalorder %v991_v13, 127  ;;  %vm497_vm5 = vcmp.lt.s32.totalorder %v991_v13, 113 }
  0x3c   :  { %72 = vrot.lane.b32.xlu0 %v917_v3, %s837_s21  ;;  %v134_v25 = vld [vmem:[#allocation5 + $0x48] sm:$0xff]  ;;  %v68_v37 = vld [vmem:[#allocation7 + $0x10] sm:$0xff]  ;;  %v109_v41 = vld [vmem:[#allocation5] sm:$0xff]  ;;  %vm570_vm6 = vcmp.lt.s32.totalorder %v991_v13, 112  ;;  %vm643_vm7 = vcmp.lt.s32.totalorder %v991_v13, 111  ;;  %s845_s28 = smov [#allocation8]  }
  0x3d   :  { %v112_v42 = vld [vmem:[#allocation5 + $0x18] sm:$0xff]  ;;  %v135_v43 = vld [vmem:[#allocation5 + $0x50] sm:$0xff]  ;;  %v66_v51 = vld [vmem:[#allocation7] sm:$0xff]  ;;  %s706_s29 = sshll.u32 %s845_s28, 4  ;;  %s707_s29 = int_to_ptr.vmem [resolvable:$true] %s706_s29 }
  0x3e   :  { %v69_v56 = vld [vmem:[#allocation7 + $0x18] sm:$0xff]  ;;  %v121_v57 = vld [vmem:[#allocation5 + $0x20] sm:$0xff]  ;;  %s804_s30 = scalar_lea.vmem %s707_s29, 512  ;;  %p809_p11 = scmp.lt.s32.totalorder %s707_s29, %s707_s29 }
  0x3f   :  { %80 = vrot.lane.b32.xlu1 %v921_v4, %s837_s21  ;;  %v124_v58 = vld [vmem:[#allocation5 + $0x38] sm:$0xff]  ;;  %v133_v62 = vld [vmem:[#allocation5 + $0x40] sm:$0xff]  ;;  %p805_p10 = scmp.ne.s32.totalorder %s707_s29, %s804_s30  ;;  %p810_p12 = scmp.lt.s32.totalorder %s804_s30, %s804_s30 }
  0x40   :  { %78 = vrot.lane.b32.xlu0 %v923_v5, %s837_s21  ;;  %v136_v63 = vld [vmem:[#allocation5 + $0x58] sm:$0xff] }
  0x41   :  { %p811_p13 = por %p810_p12, %p809_p11 }
  0x43   :  { %84 = vrot.lane.b32.xlu1 %v927_v6, %s837_s21  ;;  %p812_p0 = pnand %p811_p13, %p805_p10 }
  0x44   :  { %82 = vrot.lane.b32.xlu0 %v929_v7, %s837_s21 }
  0x47   :  { %88 = vrot.lane.b32.xlu1 %v933_v8, %s837_s21 }
  0x48   :  { %86 = vrot.lane.b32.xlu0 %v935_v9, %s837_s21 }
  0x4b   :  { %92 = vrot.lane.b32.xlu1 %v939_v10, %s837_s21 }
  0x4c   :  { %90 = vrot.lane.b32.xlu0 %v941_v11, %s837_s21 }
  0x4f   :  { %147 = vrot.lane.b32.xlu1 %v917_v3, %s838_s2 }
  0x50   :  { %145 = vrot.lane.b32.xlu0 %v911_v1, %s838_s2 }
  0x53   :  { %151 = vrot.lane.b32.xlu1 %v915_v2, %s838_s2 }
  0x54   :  { %149 = vrot.lane.b32.xlu0 %v909_v0, %s838_s2 }
  0x57   :  { %155 = vrot.lane.b32.xlu1 %v921_v4, %s838_s2 }
  0x58   :  { %153 = vrot.lane.b32.xlu0 %v923_v5, %s838_s2 }
  0x5b   :  { %159 = vrot.lane.b32.xlu1 %v927_v6, %s838_s2 }
  0x5c   :  { %157 = vrot.lane.b32.xlu0 %v929_v7, %s838_s2 }
  0x5f   :  { %163 = vrot.lane.b32.xlu1 %v933_v8, %s838_s2 }
  0x60   :  { %161 = vrot.lane.b32.xlu0 %v935_v9, %s838_s2 }
  0x63   :  { %167 = vrot.lane.b32.xlu1 %v939_v10, %s838_s2 }
  0x64   :  { %165 = vrot.lane.b32.xlu0 %v941_v11, %s838_s2 }
  0x67   :  { %220 = vrot.lane.b32.xlu1 %v917_v3, %s839_s22 }
  0x68   :  { %218 = vrot.lane.b32.xlu0 %v911_v1, %s839_s22 }
  0x6b   :  { %224 = vrot.lane.b32.xlu1 %v915_v2, %s839_s22 }
  0x6c   :  { %222 = vrot.lane.b32.xlu0 %v909_v0, %s839_s22 }
  0x6f   :  { %228 = vrot.lane.b32.xlu1 %v921_v4, %s839_s22 }
  0x70   :  { %226 = vrot.lane.b32.xlu0 %v923_v5, %s839_s22 }
  0x73   :  { %232 = vrot.lane.b32.xlu1 %v927_v6, %s839_s22 }
  0x74   :  { %230 = vrot.lane.b32.xlu0 %v929_v7, %s839_s22 }
  0x77   :  { %236 = vrot.lane.b32.xlu1 %v933_v8, %s839_s22 }
  0x78   :  { %234 = vrot.lane.b32.xlu0 %v935_v9, %s839_s22 }
  0x7b   :  { %240 = vrot.lane.b32.xlu1 %v939_v10, %s839_s22 }
  0x7c   :  { %238 = vrot.lane.b32.xlu0 %v941_v11, %s839_s22 }
  0x7f   :  { %293 = vrot.lane.b32.xlu1 %v917_v3, %s840_s23 }
  0x80   :  { %291 = vrot.lane.b32.xlu0 %v911_v1, %s840_s23 }
  0x83   :  { %297 = vrot.lane.b32.xlu1 %v915_v2, %s840_s23 }
  0x84   :  { %295 = vrot.lane.b32.xlu0 %v909_v0, %s840_s23 }
  0x87   :  { %301 = vrot.lane.b32.xlu1 %v921_v4, %s840_s23 }
  0x88   :  { %299 = vrot.lane.b32.xlu0 %v923_v5, %s840_s23 }
  0x8b   :  { %309 = vrot.lane.b32.xlu1 %v933_v8, %s840_s23 }
  0x8c   :  { %303 = vrot.lane.b32.xlu0 %v929_v7, %s840_s23 }
  0x8f   :  { %311 = vrot.lane.b32.xlu1 %v941_v11, %s840_s23 }
  0x90   :  { %305 = vrot.lane.b32.xlu0 %v927_v6, %s840_s23 }
  0x93   :  { %313 = vrot.lane.b32.xlu1 %v939_v10, %s840_s23 }
  0x94   :  { %307 = vrot.lane.b32.xlu0 %v935_v9, %s840_s23 }
  0x97   :  { %406 = vrot.lane.b32.xlu1 %v915_v2, %s841_s24 }
  0x98   :  { %400 = vrot.lane.b32.xlu0 %v911_v1, %s841_s24 }
  0x9b   :  { %418 = vrot.lane.b32.xlu1 %v933_v8, %s841_s24 }
  0x9c   :  { %412 = vrot.lane.b32.xlu0 %v929_v7, %s841_s24 }
  0x9f   :  { %408 = vrot.lane.b32.xlu1 %v923_v5, %s841_s24 }
  0xa0   :  { %402 = vrot.lane.b32.xlu0 %v917_v3, %s841_s24 }
  0xa3   :  { %420 = vrot.lane.b32.xlu1 %v941_v11, %s841_s24 }
  0xa4   :  { %414 = vrot.lane.b32.xlu0 %v927_v6, %s841_s24 }
  0xa7   :  { %410 = vrot.lane.b32.xlu1 %v921_v4, %s841_s24 }
  0xa8   :  { %404 = vrot.lane.b32.xlu0 %v909_v0, %s841_s24 }
  0xa9   :  { %v993_v14 = vpop.permute.xlu1 %74 }
  0xaa   :  { %v71_v15 = vpop.permute.xlu0 %70 }
  0xab   :  { %422 = vrot.lane.b32.xlu1 %v939_v10, %s841_s24 }
  0xac   :  { %416 = vrot.lane.b32.xlu0 %v935_v9, %s841_s24 }
  0xad   :  { %v77_v17 = vpop.permute.xlu1 %76 }
  0xae   :  { %v73_v18 = vpop.permute.xlu0 %72  ;;  %v103_v19 = vsel %vm96_vm0, %v71_v15, %v77_v17 }
  0xaf   :  { %v114_v20 = vmul.f32 %v110_v16, %v103_v19  ;;  %479 = vrot.lane.b32.xlu1 %v915_v2, %s842_s25 }
  0xb0   :  { %473 = vrot.lane.b32.xlu0 %v911_v1, %s842_s25 }
  0xb1   :  { %v81_v23 = vpop.permute.xlu1 %80  ;;  %v118_v28 = vadd.f32 %v114_v20, %v67_v21 }
  0xb2   :  { %v79_v24 = vpop.permute.xlu0 %78  ;;  %v105_v26 = vsel %vm96_vm0, %v993_v14, %v81_v23 }
  0xb3   :  { %v104_v27 = vsel %vm96_vm0, %v73_v18, %v79_v24  ;;  %491 = vrot.lane.b32.xlu1 %v933_v8, %s842_s25  ;;  %v138_v31 = vmul.f32 %v134_v25, %v105_v26 }
  0xb4   :  { %v126_v29 = vmul.f32 %v122_v22, %v104_v27  ;;  %485 = vrot.lane.b32.xlu0 %v929_v7, %s842_s25 }
  0xb5   :  { %v85_v33 = vpop.permute.xlu1 %84 }
  0xb6   :  { %v130_v32 = vadd.f32 %v126_v29, %v118_v28  ;;  %v83_v34 = vpop.permute.xlu0 %82  ;;  %v101_v36 = vsel %vm96_vm0, %v79_v24, %v85_v33  ;;  %v183_v29 = vld [vmem:[#allocation5 + $0x68] sm:$0xff] }
  0xb7   :  { %v100_v38 = vsel %vm96_vm0, %v77_v17, %v83_v34  ;;  %481 = vrot.lane.b32.xlu1 %v923_v5, %s842_s25  ;;  %v127_v44 = vmul.f32 %v123_v35, %v101_v36 }
  0xb8   :  { %v115_v39 = vmul.f32 %v111_v30, %v100_v38  ;;  %475 = vrot.lane.b32.xlu0 %v917_v3, %s842_s25  ;;  %v142_v40 = vadd.f32 %v138_v31, %v130_v32  ;;  %v207_v38 = vld [vmem:[#allocation5 + $0xa8] sm:$0xff] }
  0xb9   :  { %v89_v46 = vpop.permute.xlu1 %88 }
  0xba   :  { %v119_v45 = vadd.f32 %v115_v39, %v68_v37  ;;  %v87_v47 = vpop.permute.xlu0 %86  ;;  %v97_v48 = vsel %vm96_vm0, %v83_v34, %v89_v46  ;;  %v106_v49 = vsel %vm96_vm0, %v89_v46, %v71_v15  ;;  %v195_v34 = vld [vmem:[#allocation5 + $0x88] sm:$0xff] }
  0xbb   :  { %v102_v50 = vsel %vm96_vm0, %v81_v23, %v87_v47  ;;  %v113_v52 = vmul.f32 %v109_v41, %v106_v49  ;;  %v116_v53 = vmul.f32 %v112_v42, %v97_v48  ;;  %493 = vrot.lane.b32.xlu1 %v941_v11, %s842_s25 }
  0xbc   :  { %v131_v54 = vadd.f32 %v127_v44, %v119_v45  ;;  %v139_v55 = vmul.f32 %v135_v43, %v102_v50  ;;  %487 = vrot.lane.b32.xlu0 %v927_v6, %s842_s25  ;;  %v184_v43 = vld [vmem:[#allocation5 + $0x70] sm:$0xff] }
  0xbd   :  { %v93_v60 = vpop.permute.xlu1 %92  ;;  %v117_v19 = vadd.f32 %v113_v52, %v66_v51  ;;  %v120_v20 = vadd.f32 %v116_v53, %v69_v56  ;;  %v182_v52 = vld [vmem:[#allocation5 + $0x60] sm:$0xff]  ;;  %v185_v53 = vld [vmem:[#allocation5 + $0x78] sm:$0xff] }
  0xbe   :  { %v143_v59 = vadd.f32 %v139_v55, %v131_v54  ;;  %v91_v61 = vpop.permute.xlu0 %90  ;;  %v99_v12 = vsel %vm96_vm0, %v87_v47, %v93_v60  ;;  %v108_v15 = vsel %vm96_vm0, %v93_v60, %v993_v14  ;;  %v196_v47 = vld [vmem:[#allocation5 + $0x90] sm:$0xff] }
  0xbf   :  { %v98_v16 = vsel %vm96_vm0, %v85_v33, %v91_v61  ;;  %v107_v17 = vsel %vm96_vm0, %v91_v61, %v73_v18  ;;  %483 = vrot.lane.b32.xlu1 %v921_v4, %s842_s25  ;;  %v137_v23 = vmul.f32 %v133_v62, %v108_v15  ;;  %v140_v24 = vmul.f32 %v136_v63, %v99_v12  ;;  %v208_v54 = vld [vmem:[#allocation5 + $0xb0] sm:$0xff] }
  0xc0   :  { %v125_v21 = vmul.f32 %v121_v57, %v107_v17  ;;  %v128_v22 = vmul.f32 %v124_v58, %v98_v16  ;;  %477 = vrot.lane.b32.xlu0 %v909_v0, %s842_s25  ;;  %v197_v17 = vld [vmem:[#allocation5 + $0x98] sm:$0xff] }
  0xc1   :  { %v1044_v26 = vpop.permute.xlu1 %147 }
  0xc2   :  { %v129_v25 = vadd.f32 %v125_v21, %v117_v19  ;;  %v132_v14 = vadd.f32 %v128_v22, %v120_v20  ;;  %v146_v27 = vpop.permute.xlu0 %145 }
  0xc3   :  { %495 = vrot.lane.b32.xlu1 %v939_v10, %s842_s25 }
  0xc4   :  { %v141_v18 = vadd.f32 %v137_v23, %v129_v25  ;;  %v144_v28 = vadd.f32 %v140_v24, %v132_v14  ;;  %489 = vrot.lane.b32.xlu0 %v935_v9, %s842_s25  ;;  %v206_v24 = vld [vmem:[#allocation5 + $0xa0] sm:$0xff]  ;;  %v209_v25 = vld [vmem:[#allocation5 + $0xb8] sm:$0xff] }
  0xc5   :  { %v152_v30 = vpop.permute.xlu1 %151 }
  0xc6   :  { %v150_v31 = vpop.permute.xlu0 %149  ;;  %v176_v32 = vsel %vm169_vm1, %v146_v27, %v152_v30 }
  0xc7   :  { %v187_v33 = vmul.f32 %v183_v29, %v176_v32  ;;  %552 = vrot.lane.b32.xlu1 %v915_v2, %s843_s26 }
  0xc8   :  { %546 = vrot.lane.b32.xlu0 %v911_v1, %s843_s26 }
  0xc9   :  { %v191_v35 = vadd.f32 %v187_v33, %v142_v40  ;;  %v156_v36 = vpop.permute.xlu1 %155 }
  0xca   :  { %v154_v37 = vpop.permute.xlu0 %153  ;;  %v178_v39 = vsel %vm169_vm1, %v150_v31, %v156_v36 }
  0xcb   :  { %v177_v41 = vsel %vm169_vm1, %v1044_v26, %v154_v37  ;;  %564 = vrot.lane.b32.xlu1 %v933_v8, %s843_s26  ;;  %v211_v44 = vmul.f32 %v207_v38, %v178_v39  ;;  %v256_v38 = vld [vmem:[#allocation5 + $0xc8] sm:$0xff] }
  0xcc   :  { %v199_v42 = vmul.f32 %v195_v34, %v177_v41  ;;  %558 = vrot.lane.b32.xlu0 %v929_v7, %s843_s26 }
  0xcd   :  { %v160_v45 = vpop.permute.xlu1 %159 }
  0xce   :  { %v203_v40 = vadd.f32 %v199_v42, %v191_v35  ;;  %v158_v46 = vpop.permute.xlu0 %157  ;;  %v174_v48 = vsel %vm169_vm1, %v154_v37, %v160_v45 }
  0xcf   :  { %v173_v49 = vsel %vm169_vm1, %v152_v30, %v158_v46  ;;  %554 = vrot.lane.b32.xlu1 %v923_v5, %s843_s26  ;;  %v200_v55 = vmul.f32 %v196_v47, %v174_v48  ;;  %v280_v47 = vld [vmem:[#allocation5 + $0x108] sm:$0xff] }
  0xd0   :  { %v188_v50 = vmul.f32 %v184_v43, %v173_v49  ;;  %v215_v51 = vadd.f32 %v211_v44, %v203_v40  ;;  %548 = vrot.lane.b32.xlu0 %v917_v3, %s843_s26  ;;  %v268_v44 = vld [vmem:[#allocation5 + $0xe8] sm:$0xff] }
  0xd1   :  { %v164_v57 = vpop.permute.xlu1 %163 }
  0xd2   :  { %v192_v56 = vadd.f32 %v188_v50, %v143_v59  ;;  %v162_v58 = vpop.permute.xlu0 %161  ;;  %v170_v60 = vsel %vm169_vm1, %v158_v46, %v164_v57  ;;  %v179_v61 = vsel %vm169_vm1, %v164_v57, %v146_v27  ;;  %v194_v59 = vld [vmem:[#allocation5 + $0x80] sm:$0xff] }
  0xd3   :  { %v175_v62 = vsel %vm169_vm1, %v156_v36, %v162_v58  ;;  %v186_v63 = vmul.f32 %v182_v52, %v179_v61  ;;  %v189_v12 = vmul.f32 %v185_v53, %v170_v60  ;;  %566 = vrot.lane.b32.xlu1 %v941_v11, %s843_s26  ;;  %v257_v52 = vld [vmem:[#allocation5 + $0xd0] sm:$0xff] }
  0xd4   :  { %v204_v15 = vadd.f32 %v200_v55, %v192_v56  ;;  %v212_v16 = vmul.f32 %v208_v54, %v175_v62  ;;  %560 = vrot.lane.b32.xlu0 %v927_v6, %s843_s26  ;;  %v269_v56 = vld [vmem:[#allocation5 + $0xf0] sm:$0xff]  ;;  %v255_v62 = vld [vmem:[#allocation5 + $0xc0] sm:$0xff] }
  0xd5   :  { %v190_v19 = vadd.f32 %v186_v63, %v141_v18  ;;  %v193_v20 = vadd.f32 %v189_v12, %v144_v28  ;;  %v168_v22 = vpop.permute.xlu1 %167  ;;  %v258_v63 = vld [vmem:[#allocation5 + $0xd8] sm:$0xff]  ;;  %v281_v12 = vld [vmem:[#allocation5 + $0x110] sm:$0xff] }
  0xd6   :  { %v216_v21 = vadd.f32 %v212_v16, %v204_v15  ;;  %v166_v23 = vpop.permute.xlu0 %165  ;;  %v172_v14 = vsel %vm169_vm1, %v162_v58, %v168_v22  ;;  %v181_v27 = vsel %vm169_vm1, %v168_v22, %v150_v31 }
  0xd7   :  { %v171_v29 = vsel %vm169_vm1, %v160_v45, %v166_v23  ;;  %v180_v30 = vsel %vm169_vm1, %v166_v23, %v1044_v26  ;;  %556 = vrot.lane.b32.xlu1 %v921_v4, %s843_s26  ;;  %v210_v32 = vmul.f32 %v206_v24, %v181_v27  ;;  %v213_v33 = vmul.f32 %v209_v25, %v172_v14  ;;  %v270_v27 = vld [vmem:[#allocation5 + $0xf8] sm:$0xff] }
  0xd8   :  { %v198_v18 = vmul.f32 %v194_v59, %v180_v30  ;;  %v201_v28 = vmul.f32 %v197_v17, %v171_v29  ;;  %550 = vrot.lane.b32.xlu0 %v909_v0, %s843_s26 }
  0xd9   :  { %v1097_v31 = vpop.permute.xlu1 %220 }
  0xda   :  { %v202_v34 = vadd.f32 %v198_v18, %v190_v19  ;;  %v205_v35 = vadd.f32 %v201_v28, %v193_v20  ;;  %v219_v36 = vpop.permute.xlu0 %218 }
  0xdb   :  { %568 = vrot.lane.b32.xlu1 %v939_v10, %s843_s26 }
  0xdc   :  { %v214_v26 = vadd.f32 %v210_v32, %v202_v34  ;;  %v217_v37 = vadd.f32 %v213_v33, %v205_v35  ;;  %562 = vrot.lane.b32.xlu0 %v935_v9, %s843_s26  ;;  %v279_v33 = vld [vmem:[#allocation5 + $0x100] sm:$0xff]  ;;  %v282_v34 = vld [vmem:[#allocation5 + $0x118] sm:$0xff] }
  0xdd   :  { %v225_v39 = vpop.permute.xlu1 %224 }
  0xde   :  { %v223_v41 = vpop.permute.xlu0 %222  ;;  %v249_v42 = vsel %vm242_vm2, %v219_v36, %v225_v39 }
  0xdf   :  { %v260_v43 = vmul.f32 %v256_v38, %v249_v42  ;;  %625 = vrot.lane.b32.xlu1 %v915_v2, %s844_s27 }
  0xe0   :  { %619 = vrot.lane.b32.xlu0 %v911_v1, %s844_s27 }
  0xe1   :  { %v264_v40 = vadd.f32 %v260_v43, %v215_v51  ;;  %v229_v45 = vpop.permute.xlu1 %228 }
  0xe2   :  { %v227_v46 = vpop.permute.xlu0 %226  ;;  %v251_v48 = vsel %vm242_vm2, %v223_v41, %v229_v45 }
  0xe3   :  { %v250_v49 = vsel %vm242_vm2, %v1097_v31, %v227_v46  ;;  %637 = vrot.lane.b32.xlu1 %v933_v8, %s844_s27  ;;  %v284_v53 = vmul.f32 %v280_v47, %v251_v48  ;;  %v329_v47 = vld [vmem:[#allocation5 + $0x128] sm:$0xff] }
  0xe4   :  { %v272_v50 = vmul.f32 %v268_v44, %v250_v49  ;;  %631 = vrot.lane.b32.xlu0 %v929_v7, %s844_s27 }
  0xe5   :  { %v233_v54 = vpop.permute.xlu1 %232 }
  0xe6   :  { %v276_v51 = vadd.f32 %v272_v50, %v264_v40  ;;  %v231_v55 = vpop.permute.xlu0 %230  ;;  %v247_v57 = vsel %vm242_vm2, %v227_v46, %v233_v54 }
  0xe7   :  { %v246_v58 = vsel %vm242_vm2, %v225_v39, %v231_v55  ;;  %627 = vrot.lane.b32.xlu1 %v923_v5, %s844_s27  ;;  %v273_v15 = vmul.f32 %v269_v56, %v247_v57  ;;  %v353_v56 = vld [vmem:[#allocation5 + $0x168] sm:$0xff] }
  0xe8   :  { %v261_v60 = vmul.f32 %v257_v52, %v246_v58  ;;  %v288_v61 = vadd.f32 %v284_v53, %v276_v51  ;;  %621 = vrot.lane.b32.xlu0 %v917_v3, %s844_s27  ;;  %v341_v53 = vld [vmem:[#allocation5 + $0x148] sm:$0xff] }
  0xe9   :  { %v237_v59 = vpop.permute.xlu1 %236 }
  0xea   :  { %v265_v16 = vadd.f32 %v261_v60, %v216_v21  ;;  %v235_v17 = vpop.permute.xlu0 %234  ;;  %v243_v19 = vsel %vm242_vm2, %v231_v55, %v237_v59  ;;  %v252_v20 = vsel %vm242_vm2, %v237_v59, %v219_v36  ;;  %v267_v21 = vld [vmem:[#allocation5 + $0xe0] sm:$0xff] }
  0xeb   :  { %v248_v22 = vsel %vm242_vm2, %v229_v45, %v235_v17  ;;  %v259_v23 = vmul.f32 %v255_v62, %v252_v20  ;;  %v262_v24 = vmul.f32 %v258_v63, %v243_v19  ;;  %639 = vrot.lane.b32.xlu1 %v941_v11, %s844_s27  ;;  %v328_v62 = vld [vmem:[#allocation5 + $0x120] sm:$0xff]  ;;  %v330_v63 = vld [vmem:[#allocation5 + $0x130] sm:$0xff] }
  0xec   :  { %v277_v25 = vadd.f32 %v273_v15, %v265_v16  ;;  %v285_v14 = vmul.f32 %v281_v12, %v248_v22  ;;  %633 = vrot.lane.b32.xlu0 %v927_v6, %s844_s27  ;;  %v331_v12 = vld [vmem:[#allocation5 + $0x138] sm:$0xff] }
  0xed   :  { %v263_v29 = vadd.f32 %v259_v23, %v214_v26  ;;  %v266_v30 = vadd.f32 %v262_v24, %v217_v37  ;;  %v241_v28 = vpop.permute.xlu1 %240 }
  0xee   :  { %v289_v18 = vadd.f32 %v285_v14, %v277_v25  ;;  %v239_v32 = vpop.permute.xlu0 %238  ;;  %v245_v35 = vsel %vm242_vm2, %v235_v17, %v241_v28  ;;  %v254_v36 = vsel %vm242_vm2, %v241_v28, %v223_v41  ;;  %v340_v14 = vld [vmem:[#allocation5 + $0x140] sm:$0xff] }
  0xef   :  { %v244_v38 = vsel %vm242_vm2, %v233_v54, %v239_v32  ;;  %v253_v39 = vsel %vm242_vm2, %v239_v32, %v1097_v31  ;;  %629 = vrot.lane.b32.xlu1 %v921_v4, %s844_s27  ;;  %v283_v42 = vmul.f32 %v279_v33, %v254_v36  ;;  %v286_v43 = vmul.f32 %v282_v34, %v245_v35  ;;  %v364_v35 = vld [vmem:[#allocation5 + $0x180] sm:$0xff] }
  0xf0   :  { %v271_v26 = vmul.f32 %v267_v21, %v253_v39  ;;  %v274_v37 = vmul.f32 %v270_v27, %v244_v38  ;;  %623 = vrot.lane.b32.xlu0 %v909_v0, %s844_s27  ;;  %v342_v21 = vld [vmem:[#allocation5 + $0x150] sm:$0xff]  ;;  %v343_v27 = vld [vmem:[#allocation5 + $0x158] sm:$0xff] }
  0xf1   :  { %v294_v41 = vpop.permute.xlu1 %293 }
  0xf2   :  { %v275_v44 = vadd.f32 %v271_v26, %v263_v29  ;;  %v278_v40 = vadd.f32 %v274_v37, %v266_v30  ;;  %v292_v45 = vpop.permute.xlu0 %291  ;;  %v365_v29 = vld [vmem:[#allocation5 + $0x188] sm:$0xff]  ;;  %v366_v26 = vld [vmem:[#allocation5 + $0x190] sm:$0xff] }
  0xf3   :  { %641 = vrot.lane.b32.xlu1 %v939_v10, %s844_s27 }
  0xf4   :  { %v287_v31 = vadd.f32 %v283_v42, %v275_v44  ;;  %v290_v46 = vadd.f32 %v286_v43, %v278_v40  ;;  %635 = vrot.lane.b32.xlu0 %v935_v9, %s844_s27  ;;  %v367_v44 = vld [vmem:[#allocation5 + $0x198] sm:$0xff]  ;;  %v352_v40 = vld [vmem:[#allocation5 + $0x160] sm:$0xff] }
  0xf5   :  { %v298_v48 = vpop.permute.xlu1 %297 }
  0xf6   :  { %v296_v49 = vpop.permute.xlu0 %295  ;;  %v322_v50 = vsel %vm315_vm3, %v292_v45, %v298_v48 }
  0xf7   :  { %v333_v52 = vmul.f32 %v329_v47, %v322_v50 }
  0xf9   :  { %v337_v51 = vadd.f32 %v333_v52, %v288_v61  ;;  %v302_v54 = vpop.permute.xlu1 %301  ;;  %v370_v52 = vmul.f32 %v366_v26, %v929_v7  ;;  %v388_v7 = vld [vmem:[#allocation5 + $0x1c0] sm:$0xff] }
  0xfa   :  { %v300_v55 = vpop.permute.xlu0 %299  ;;  %v324_v57 = vsel %vm315_vm3, %v296_v49, %v302_v54 }
  0xfb   :  { %v323_v58 = vsel %vm315_vm3, %v294_v41, %v300_v55  ;;  %v357_v15 = vmul.f32 %v353_v56, %v324_v57  ;;  %v377_v56 = vld [vmem:[#allocation5 + $0x1a8] sm:$0xff] }
  0xfc   :  { %v345_v60 = vmul.f32 %v341_v53, %v323_v58 }
  0xfd   :  { %v310_v59 = vpop.permute.xlu1 %309 }
  0xfe   :  { %v349_v16 = vadd.f32 %v345_v60, %v337_v51  ;;  %v304_v17 = vpop.permute.xlu0 %303  ;;  %v325_v61 = vsel %vm315_vm3, %v310_v59, %v292_v45  ;;  %v368_v45 = vmul.f32 %v364_v35, %v911_v1  ;;  %v376_v51 = vld [vmem:[#allocation5 + $0x1a0] sm:$0xff]  ;;  %v378_v60 = vld [vmem:[#allocation5 + $0x1b0] sm:$0xff] }
  0xff   :  { %v316_v19 = vsel %vm315_vm3, %v304_v17, %v310_v59  ;;  %v319_v20 = vsel %vm315_vm3, %v298_v48, %v304_v17  ;;  %v332_v23 = vmul.f32 %v328_v62, %v325_v61  ;;  %v380_v59 = vmul.f32 %v376_v51, %v917_v3  ;;  %v390_v17 = vld [vmem:[#allocation5 + $0x1d0] sm:$0xff] }
 0x100   :  { %v361_v22 = vadd.f32 %v357_v15, %v349_v16  ;;  %v334_v24 = vmul.f32 %v330_v63, %v319_v20  ;;  %v335_v25 = vmul.f32 %v331_v12, %v316_v19  ;;  %v391_v15 = vld [vmem:[#allocation5 + $0x1d8] sm:$0xff] }
 0x101   :  { %v336_v30 = vadd.f32 %v332_v23, %v287_v31  ;;  %v312_v33 = vpop.permute.xlu1 %311  ;;  %v354_v31 = vld [vmem:[#allocation5 + $0x170] sm:$0xff]  ;;  %v395_v3 = vmul.f32 %v391_v15, %v939_v10 }
 0x102   :  { %v338_v28 = vadd.f32 %v334_v24, %v289_v18  ;;  %v339_v32 = vadd.f32 %v335_v25, %v290_v46  ;;  %v306_v34 = vpop.permute.xlu0 %305  ;;  %v326_v36 = vsel %vm315_vm3, %v312_v33, %v294_v41  ;;  %v369_v18 = vmul.f32 %v365_v29, %v915_v2  ;;  %v355_v46 = vld [vmem:[#allocation5 + $0x178] sm:$0xff]  ;;  %v389_v25 = vld [vmem:[#allocation5 + $0x1c8] sm:$0xff] }
 0x103   :  { %v317_v38 = vsel %vm315_vm3, %v306_v34, %v312_v33  ;;  %v320_v39 = vsel %vm315_vm3, %v300_v55, %v306_v34  ;;  %v344_v37 = vmul.f32 %v340_v14, %v326_v36  ;;  %v379_v55 = vld [vmem:[#allocation5 + $0x1b8] sm:$0xff]  ;;  %v371_v2 = vmul.f32 %v367_v44, %v933_v8  ;;  %v439_v36 = vld [vmem:[#allocation5 + $0x1f0] sm:$0xff] }
 0x104   :  { %v346_v42 = vmul.f32 %v342_v21, %v320_v39  ;;  %v347_v43 = vmul.f32 %v343_v27, %v317_v38  ;;  %v373_v16 = vadd.f32 %v369_v18, %v361_v22  ;;  %v381_v8 = vmul.f32 %v377_v56, %v923_v5  ;;  %v437_v5 = vld [vmem:[#allocation5 + $0x1e0] sm:$0xff] }
 0x105   :  { %v348_v47 = vadd.f32 %v344_v37, %v336_v30  ;;  %v314_v50 = vpop.permute.xlu1 %313  ;;  %v382_v24 = vmul.f32 %v378_v60, %v927_v6  ;;  %v392_v14 = vmul.f32 %v388_v7, %v909_v0  ;;  %v394_v29 = vmul.f32 %v390_v17, %v935_v9  ;;  %v440_v30 = vld [vmem:[#allocation5 + $0x1f8] sm:$0xff]  ;;  %v438_v0 = vld [vmem:[#allocation5 + $0x1e8] sm:$0xff] }
 0x106   :  { %v350_v41 = vadd.f32 %v346_v42, %v338_v28  ;;  %v351_v48 = vadd.f32 %v347_v43, %v339_v32  ;;  %v308_v53 = vpop.permute.xlu0 %307  ;;  %v327_v57 = vsel %vm315_vm3, %v314_v50, %v296_v49  ;;  %v383_v49 = vmul.f32 %v379_v55, %v941_v11 }
 0x107   :  { %v318_v1 = vsel %vm315_vm3, %v308_v53, %v314_v50  ;;  %v321_v58 = vsel %vm315_vm3, %v302_v54, %v308_v53  ;;  %v356_v62 = vmul.f32 %v352_v40, %v327_v57  ;;  %v385_v28 = vadd.f32 %v381_v8, %v373_v16  ;;  %v450_v50 = vld [vmem:[#allocation5 + $0x208] sm:$0xff] }
 0x108   :  { %v358_v63 = vmul.f32 %v354_v31, %v321_v58  ;;  %v359_v12 = vmul.f32 %v355_v46, %v318_v1  ;;  %v393_v32 = vmul.f32 %v389_v25, %v921_v4 }
 0x109   :  { %v360_v61 = vadd.f32 %v356_v62, %v348_v47  ;;  %v407_v54 = vpop.permute.xlu1 %406 }
 0x10a   :  { %v362_v19 = vadd.f32 %v358_v63, %v350_v41  ;;  %v363_v20 = vadd.f32 %v359_v12, %v351_v48  ;;  %v401_v23 = vpop.permute.xlu0 %400  ;;  %v397_v44 = vadd.f32 %v393_v32, %v385_v28  ;;  %v461_v32 = vld [vmem:[#allocation5 + $0x220] sm:$0xff] }
 0x10b   :  { %v431_v22 = vsel %vm424_vm4, %v401_v23, %v407_v54  ;;  %v372_v21 = vadd.f32 %v368_v45, %v360_v61 }
 0x10c   :  { %v374_v11 = vadd.f32 %v370_v52, %v362_v19  ;;  %v375_v27 = vadd.f32 %v371_v2, %v363_v20  ;;  %v441_v39 = vmul.f32 %v437_v5, %v431_v22 }
 0x10d   :  { %v384_v33 = vadd.f32 %v380_v59, %v372_v21  ;;  %v419_v6 = vpop.permute.xlu1 %418 }
 0x10e   :  { %v387_v34 = vadd.f32 %v383_v49, %v375_v27  ;;  %v386_v35 = vadd.f32 %v382_v24, %v374_v11  ;;  %v413_v38 = vpop.permute.xlu0 %412  ;;  %v434_v10 = vsel %vm424_vm4, %v419_v6, %v401_v23  ;;  %v451_v27 = vld [vmem:[#allocation5 + $0x210] sm:$0xff] }
 0x10f   :  { %v425_v26 = vsel %vm424_vm4, %v413_v38, %v419_v6  ;;  %v428_v9 = vsel %vm424_vm4, %v407_v54, %v413_v38  ;;  %v396_v37 = vadd.f32 %v392_v14, %v384_v33  ;;  %v444_v4 = vmul.f32 %v440_v30, %v434_v10  ;;  %v449_v14 = vld [vmem:[#allocation5 + $0x200] sm:$0xff]  ;;  %v464_v6 = vld [vmem:[#allocation5 + $0x238] sm:$0xff]  ;;  %v463_v38 = vld [vmem:[#allocation5 + $0x230] sm:$0xff] }
 0x110   :  { %v399_v42 = vadd.f32 %v395_v3, %v387_v34  ;;  %v398_v43 = vadd.f32 %v394_v29, %v386_v35  ;;  %v442_v18 = vmul.f32 %v438_v0, %v428_v9  ;;  %v443_v40 = vmul.f32 %v439_v36, %v425_v26  ;;  %v452_v3 = vld [vmem:[#allocation5 + $0x218] sm:$0xff]  ;;  %v462_v35 = vld [vmem:[#allocation5 + $0x228] sm:$0xff]  ;;  %v510_v10 = vld [vmem:[#allocation5 + $0x240] sm:$0xff] }
 0x111   :  { %v445_v45 = vadd.f32 %v441_v39, %v396_v37  ;;  %v409_v46 = vpop.permute.xlu1 %408 }
 0x112   :  { %v448_v31 = vadd.f32 %v444_v4, %v399_v42  ;;  %v403_v47 = vpop.permute.xlu0 %402  ;;  %v446_v41 = vadd.f32 %v442_v18, %v397_v44  ;;  %v1200_v48 = vadd.f32 %v443_v40, %v398_v43  ;;  %v513_v4 = vld [vmem:[#allocation5 + $0x258] sm:$0xff] }
 0x113   :  { %v432_v22 = vsel %vm424_vm4, %v403_v47, %v409_v46 }
 0x114   :  { %v453_v30 = vmul.f32 %v449_v14, %v432_v22 }
 0x115   :  { %v421_v52 = vpop.permute.xlu1 %420 }
 0x116   :  { %v415_v53 = vpop.permute.xlu0 %414  ;;  %v435_v21 = vsel %vm424_vm4, %v421_v52, %v403_v47  ;;  %v457_v18 = vadd.f32 %v453_v30, %v445_v45 }
 0x117   :  { %v429_v51 = vsel %vm424_vm4, %v409_v46, %v415_v53  ;;  %v426_v5 = vsel %vm424_vm4, %v415_v53, %v421_v52  ;;  %v456_v28 = vmul.f32 %v452_v3, %v435_v21  ;;  %v512_v52 = vld [vmem:[#allocation5 + $0x250] sm:$0xff] }
 0x118   :  { %v454_v55 = vmul.f32 %v450_v50, %v429_v51  ;;  %v455_v36 = vmul.f32 %v451_v27, %v426_v5  ;;  %v511_v50 = vld [vmem:[#allocation5 + $0x248] sm:$0xff]  ;;  %v524_v21 = vld [vmem:[#allocation5 + $0x270] sm:$0xff] }
 0x119   :  { %v411_v57 = vpop.permute.xlu1 %410  ;;  %v460_v40 = vadd.f32 %v456_v28, %v448_v31  ;;  %v534_v28 = vld [vmem:[#allocation5 + $0x280] sm:$0xff] }
 0x11a   :  { %v1204_v56 = vadd.f32 %v454_v55, %v446_v41  ;;  %v405_v2 = vpop.permute.xlu0 %404  ;;  %v459_v55 = vadd.f32 %v455_v36, %v1200_v48 }
 0x11b   :  { %v433_v33 = vsel %vm424_vm4, %v405_v2, %v411_v57 }
 0x11c   :  { %v465_v37 = vmul.f32 %v461_v32, %v433_v33 }
 0x11d   :  { %v423_v1 = vpop.permute.xlu1 %422 }
 0x11e   :  { %v417_v58 = vpop.permute.xlu0 %416  ;;  %v436_v34 = vsel %vm424_vm4, %v423_v1, %v405_v2  ;;  %v522_v2 = vld [vmem:[#allocation5 + $0x260] sm:$0xff] }
 0x11f   :  { %v430_v0 = vsel %vm424_vm4, %v411_v57, %v417_v58  ;;  %v427_v39 = vsel %vm424_vm4, %v417_v58, %v423_v1  ;;  %v468_v42 = vmul.f32 %v464_v6, %v436_v34  ;;  %v469_v1 = vadd.f32 %v465_v37, %v457_v18  ;;  %v537_v6 = vld [vmem:[#allocation5 + $0x298] sm:$0xff] }
 0x120   :  { %v466_v46 = vmul.f32 %v462_v35, %v430_v0  ;;  %v467_v47 = vmul.f32 %v463_v38, %v427_v39  ;;  %v536_v0 = vld [vmem:[#allocation5 + $0x290] sm:$0xff]  ;;  %v583_v39 = vld [vmem:[#allocation5 + $0x2a0] sm:$0xff] }
 0x121   :  { %v480_v60 = vpop.permute.xlu1 %479  ;;  %v472_v58 = vadd.f32 %v468_v42, %v460_v40  ;;  %v584_v40 = vld [vmem:[#allocation5 + $0x2a8] sm:$0xff] }
 0x122   :  { %v474_v62 = vpop.permute.xlu0 %473  ;;  %v470_v14 = vadd.f32 %v466_v46, %v1204_v56  ;;  %v471_v5 = vadd.f32 %v467_v47, %v459_v55 }
 0x123   :  { %v504_v26 = vsel %vm497_vm5, %v474_v62, %v480_v60 }
 0x124   :  { %v514_v41 = vmul.f32 %v510_v10, %v504_v26 }
 0x125   :  { %v492_v63 = vpop.permute.xlu1 %491 }
 0x126   :  { %v486_v12 = vpop.permute.xlu0 %485  ;;  %v507_v43 = vsel %vm497_vm5, %v492_v63, %v474_v62  ;;  %v525_v62 = vld [vmem:[#allocation5 + $0x278] sm:$0xff] }
 0x127   :  { %v498_v53 = vsel %vm497_vm5, %v486_v12, %v492_v63  ;;  %v501_v51 = vsel %vm497_vm5, %v480_v60, %v486_v12  ;;  %v517_v57 = vmul.f32 %v513_v4, %v507_v43  ;;  %v523_v60 = vld [vmem:[#allocation5 + $0x268] sm:$0xff]  ;;  %v586_v4 = vld [vmem:[#allocation5 + $0x2b8] sm:$0xff] }
 0x128   :  { %v515_v22 = vmul.f32 %v511_v50, %v501_v51  ;;  %v516_v3 = vmul.f32 %v512_v52, %v498_v53  ;;  %v595_v52 = vld [vmem:[#allocation5 + $0x2c0] sm:$0xff] }
 0x129   :  { %v1206_v7 = vpop.permute.xlu1 %481  ;;  %v521_v32 = vadd.f32 %v517_v57, %v472_v58 }
 0x12a   :  { %v476_v15 = vpop.permute.xlu0 %475  ;;  %v519_v26 = vadd.f32 %v515_v22, %v470_v14  ;;  %v520_v37 = vadd.f32 %v516_v3, %v471_v5  ;;  %v607_v22 = vld [vmem:[#allocation5 + $0x2e0] sm:$0xff] }
 0x12b   :  { %v505_v45 = vsel %vm497_vm5, %v476_v15, %v1206_v7 }
 0x12c   :  { %v526_v30 = vmul.f32 %v522_v2, %v505_v45 }
 0x12d   :  { %v1208_v16 = vpop.permute.xlu1 %493 }
 0x12e   :  { %v1210_v59 = vpop.permute.xlu0 %487  ;;  %v508_v63 = vsel %vm497_vm5, %v1208_v16, %v476_v15  ;;  %v518_v15 = vadd.f32 %v514_v41, %v469_v1 }
 0x12f   :  { %v502_v48 = vsel %vm497_vm5, %v1206_v7, %v1210_v59  ;;  %v499_v27 = vsel %vm497_vm5, %v1210_v59, %v1208_v16  ;;  %v529_v33 = vmul.f32 %v525_v62, %v508_v63  ;;  %v535_v59 = vld [vmem:[#allocation5 + $0x288] sm:$0xff]  ;;  %v598_v62 = vld [vmem:[#allocation5 + $0x2d8] sm:$0xff] }
 0x130   :  { %v527_v56 = vmul.f32 %v523_v60, %v502_v48  ;;  %v528_v16 = vmul.f32 %v524_v21, %v499_v27  ;;  %v530_v43 = vadd.f32 %v526_v30, %v518_v15  ;;  %v596_v15 = vld [vmem:[#allocation5 + $0x2c8] sm:$0xff]  ;;  %v597_v30 = vld [vmem:[#allocation5 + $0x2d0] sm:$0xff] }
 0x131   :  { %v1212_v49 = vpop.permute.xlu1 %483  ;;  %v533_v51 = vadd.f32 %v529_v33, %v521_v32 }
 0x132   :  { %v1214_v8 = vpop.permute.xlu0 %477  ;;  %v531_v55 = vadd.f32 %v527_v56, %v519_v26  ;;  %v532_v57 = vadd.f32 %v528_v16, %v520_v37  ;;  %v610_v56 = vld [vmem:[#allocation5 + $0x2f8] sm:$0xff]  ;;  %v668_v26 = vld [vmem:[#allocation5 + $0x320] sm:$0xff] }
 0x133   :  { %v506_v7 = vsel %vm497_vm5, %v1214_v8, %v1212_v49 }
 0x134   :  { %v538_v42 = vmul.f32 %v534_v28, %v506_v7 }
 0x135   :  { %v1216_v17 = vpop.permute.xlu1 %495 }
 0x136   :  { %v1218_v61 = vpop.permute.xlu0 %489  ;;  %v509_v34 = vsel %vm497_vm5, %v1216_v17, %v1214_v8  ;;  %v542_v45 = vadd.f32 %v538_v42, %v530_v43 }
 0x137   :  { %v500_v36 = vsel %vm497_vm5, %v1218_v61, %v1216_v17  ;;  %v503_v38 = vsel %vm497_vm5, %v1212_v49, %v1218_v61  ;;  %v541_v18 = vmul.f32 %v537_v6, %v509_v34  ;;  %v585_v49 = vld [vmem:[#allocation5 + $0x2b0] sm:$0xff]  ;;  %v656_v34 = vld [vmem:[#allocation5 + $0x300] sm:$0xff] }
 0x138   :  { %v539_v47 = vmul.f32 %v535_v59, %v503_v38  ;;  %v540_v41 = vmul.f32 %v536_v0, %v500_v36  ;;  %v608_v0 = vld [vmem:[#allocation5 + $0x2e8] sm:$0xff]  ;;  %v609_v36 = vld [vmem:[#allocation5 + $0x2f0] sm:$0xff] }
 0x139   :  { %v1220_v19 = vpop.permute.xlu1 %552 }
 0x13a   :  { %v1222_v20 = vpop.permute.xlu0 %546  ;;  %v543_v60 = vadd.f32 %v539_v47, %v531_v55  ;;  %v544_v48 = vadd.f32 %v540_v41, %v532_v57  ;;  %v670_v57 = vld [vmem:[#allocation5 + $0x330] sm:$0xff] }
 0x13b   :  { %v577_v8 = vsel %vm570_vm6, %v1222_v20, %v1220_v19 }
 0x13c   :  { %v587_v50 = vmul.f32 %v583_v39, %v577_v8  ;;  %v659_v39 = vld [vmem:[#allocation5 + $0x318] sm:$0xff] }
 0x13d   :  { %v1224_v54 = vpop.permute.xlu1 %564 }
 0x13e   :  { %v1226_v23 = vpop.permute.xlu0 %558  ;;  %v580_v17 = vsel %vm570_vm6, %v1224_v54, %v1222_v20  ;;  %v591_v14 = vadd.f32 %v587_v50, %v542_v45 }
 0x13f   :  { %v571_v61 = vsel %vm570_vm6, %v1226_v23, %v1224_v54  ;;  %v574_v46 = vsel %vm570_vm6, %v1220_v19, %v1226_v23  ;;  %v590_v2 = vmul.f32 %v586_v4, %v580_v17  ;;  %v545_v23 = vadd.f32 %v541_v18, %v533_v51 }
 0x140   :  { %v588_v1 = vmul.f32 %v584_v40, %v574_v46  ;;  %v589_v58 = vmul.f32 %v585_v49, %v571_v61  ;;  %v658_v49 = vld [vmem:[#allocation5 + $0x310] sm:$0xff]  ;;  %v671_v61 = vld [vmem:[#allocation5 + $0x338] sm:$0xff] }
 0x141   :  { %v1228_v24 = vpop.permute.xlu1 %554  ;;  %v594_v27 = vadd.f32 %v590_v2, %v545_v23 }
 0x142   :  { %v1230_v25 = vpop.permute.xlu0 %548  ;;  %v592_v32 = vadd.f32 %v588_v1, %v543_v60  ;;  %v593_v33 = vadd.f32 %v589_v58, %v544_v48 }
 0x143   :  { %v578_v20 = vsel %vm570_vm6, %v1230_v25, %v1228_v24 }
 0x144   :  { %v599_v63 = vmul.f32 %v595_v52, %v578_v20  ;;  %v669_v52 = vld [vmem:[#allocation5 + $0x328] sm:$0xff] }
 0x145   :  { %v1236_v11 = vpop.permute.xlu1 %566 }
 0x146   :  { %v1241_v29 = vpop.permute.xlu0 %560  ;;  %v581_v19 = vsel %vm570_vm6, %v1236_v11, %v1230_v25 }
 0x147   :  { %v602_v5 = vmul.f32 %v598_v62, %v581_v19  ;;  %v572_v25 = vsel %vm570_vm6, %v1241_v29, %v1236_v11  ;;  %v575_v28 = vsel %vm570_vm6, %v1228_v24, %v1241_v29  ;;  %v603_v11 = vadd.f32 %v599_v63, %v591_v14 }
 0x148   :  { %v601_v38 = vmul.f32 %v597_v30, %v572_v25  ;;  %v681_v30 = vld [vmem:[#allocation5 + $0x348] sm:$0xff]  ;;  %v682_v25 = vld [vmem:[#allocation5 + $0x350] sm:$0xff] }
 0x149   :  { %v1253_v9 = vpop.permute.xlu1 %556  ;;  %v606_v4 = vadd.f32 %v602_v5, %v594_v27  ;;  %v683_v27 = vld [vmem:[#allocation5 + $0x358] sm:$0xff] }
 0x14a   :  { %v1257_v44 = vpop.permute.xlu0 %550 }
 0x14b   :  { %v579_v3 = vsel %vm570_vm6, %v1257_v44, %v1253_v9 }
 0x14c   :  { %v611_v59 = vmul.f32 %v607_v22, %v579_v3 }
 0x14d   :  { %v1268_v31 = vpop.permute.xlu1 %568 }
 0x14e   :  { %v1277_v12 = vpop.permute.xlu0 %562  ;;  %v582_v6 = vsel %vm570_vm6, %v1268_v31, %v1257_v44  ;;  %v600_v44 = vmul.f32 %v596_v15, %v575_v28  ;;  %v615_v47 = vadd.f32 %v611_v59, %v603_v11 }
 0x14f   :  { %v573_v24 = vsel %vm570_vm6, %v1277_v12, %v1268_v31  ;;  %v576_v29 = vsel %vm570_vm6, %v1253_v9, %v1277_v12  ;;  %v614_v17 = vmul.f32 %v610_v56, %v582_v6  ;;  %v657_v31 = vld [vmem:[#allocation5 + $0x308] sm:$0xff] }
 0x150   :  { %v612_v12 = vmul.f32 %v608_v0, %v576_v29  ;;  %v613_v40 = vmul.f32 %v609_v36, %v573_v24  ;;  %v604_v51 = vadd.f32 %v600_v44, %v592_v32 }
 0x151   :  { %v1292_v35 = vpop.permute.xlu1 %625 }
 0x152   :  { %v620_v10 = vpop.permute.xlu0 %619  ;;  %v616_v23 = vadd.f32 %v612_v12, %v604_v51 }
 0x153   :  { %v650_v16 = vsel %vm643_vm7, %v620_v10, %v1292_v35 }
 0x154   :  { %v660_v43 = vmul.f32 %v656_v34, %v650_v16 }
 0x155   :  { %v638_v53 = vpop.permute.xlu1 %637 }
 0x156   :  { %v632_v54 = vpop.permute.xlu0 %631  ;;  %v653_v8 = vsel %vm643_vm7, %v638_v53, %v620_v10  ;;  %v664_v1 = vadd.f32 %v660_v43, %v615_v47 }
 0x157   :  { %v647_v18 = vsel %vm643_vm7, %v1292_v35, %v632_v54  ;;  %v644_v10 = vsel %vm643_vm7, %v632_v54, %v638_v53  ;;  %v663_v41 = vmul.f32 %v659_v39, %v653_v8  ;;  %v605_v35 = vadd.f32 %v601_v38, %v593_v33  ;;  %v680_v53 = vld [vmem:[#allocation5 + $0x340] sm:$0xff] }
 0x158   :  { %v661_v55 = vmul.f32 %v657_v31, %v647_v18  ;;  %v618_v54 = vadd.f32 %v614_v17, %v606_v4  ;;  %v662_v58 = vmul.f32 %v658_v49, %v644_v10 }
 0x159   :  { %v628_v21 = vpop.permute.xlu1 %627  ;;  %v617_v63 = vadd.f32 %v613_v40, %v605_v35 }
 0x15a   :  { %v622_v7 = vpop.permute.xlu0 %621  ;;  %v667_v14 = vadd.f32 %v663_v41, %v618_v54  ;;  %v665_v5 = vadd.f32 %v661_v55, %v616_v23 }
 0x15b   :  { %v651_v37 = vsel %vm643_vm7, %v622_v7, %v628_v21  ;;  %v666_v28 = vadd.f32 %v662_v58, %v617_v63 }
 0x15c   :  { %v672_v50 = vmul.f32 %v668_v26, %v651_v37 }
 0x15d   :  { %v640_v42 = vpop.permute.xlu1 %639 }
 0x15e   :  { %v634_v9 = vpop.permute.xlu0 %633  ;;  %v654_v46 = vsel %vm643_vm7, %v640_v42, %v622_v7  ;;  %v676_v22 = vadd.f32 %v672_v50, %v664_v1 }
 0x15f   :  { %v648_v20 = vsel %vm643_vm7, %v628_v21, %v634_v9  ;;  %v645_v2 = vsel %vm643_vm7, %v634_v9, %v640_v42  ;;  %v675_v62 = vmul.f32 %v671_v61, %v654_v46 }
 0x160   :  { %v673_v60 = vmul.f32 %v669_v52, %v648_v20  ;;  %v674_v3 = vmul.f32 %v670_v57, %v645_v2 }
 0x161   :  { %v630_v45 = vpop.permute.xlu1 %629  ;;  %v679_v7 = vadd.f32 %v675_v62, %v667_v14 }
 0x162   :  { %v624_v19 = vpop.permute.xlu0 %623  ;;  %v677_v6 = vadd.f32 %v673_v60, %v665_v5  ;;  %v678_v59 = vadd.f32 %v674_v3, %v666_v28 }
 0x163   :  { %v652_v48 = vsel %vm643_vm7, %v624_v19, %v630_v45 }
 0x164   :  { %v684_v21 = vmul.f32 %v680_v53, %v652_v48 }
 0x165   :  { %v642_v15 = vpop.permute.xlu1 %641 }
 0x166   :  { %v688_v32 = vadd.f32 %v684_v21, %v676_v22  ;;  %v655_v33 = vsel %vm643_vm7, %v642_v15, %v624_v19  ;;  %v636_v56 = vpop.permute.xlu0 %635 }
 0x167   :  { %v687_v34 = vmul.f32 %v683_v27, %v655_v33  ;;  %v646_v16 = vsel %vm643_vm7, %v636_v56, %v642_v15  ;;  %v649_v11 = vsel %vm643_vm7, %v630_v45, %v636_v56 }
 0x168   :  { %730 = vtanh.f32 %v688_v32  ;;  %v685_v0 = vmul.f32 %v681_v30, %v649_v11  ;;  %v686_v36 = vmul.f32 %v682_v25, %v646_v16 }
 0x169   :  { %v691_v24 = vadd.f32 %v687_v34, %v679_v7 }
 0x16a   :  { %v689_v29 = vadd.f32 %v685_v0, %v677_v6  ;;  %v690_v44 = vadd.f32 %v686_v36, %v678_v59 }
 0x16b   :  { %732 = vtanh.f32 %v691_v24 }
 0x16c   :  { %734 = vtanh.f32 %v689_v29 }
 0x16d   :  { %736 = vtanh.f32 %v690_v44 }
 0x172   :  { %v731_v38 = vpop.eup %730 }
 0x173   :  { %696 = vst [vmem:[#allocation8] sm:$0xff] %v731_v38 }
 0x175   :  { %v733_v39 = vpop.eup %732 }
 0x176   :  { %v735_v8 = vpop.eup %734  ;;  %699 = vst [vmem:[#allocation8 + $0x18] sm:$0xff] %v733_v39 }
 0x177   :  { %v737_v13 = vpop.eup %736  ;;  %697 = vst [vmem:[#allocation8 + $0x8] sm:$0xff] %v735_v8 }
 0x178   :  { %698 = vst [vmem:[#allocation8 + $0x10] sm:$0xff] %v737_v13 }
 0x179   :  { %815 = shalt.err (!%p812_p0)
}
 0x17a   :  { %s816_s6 = scalar_lea.hbm %s1392_s3, 512 }
 0x17b   :  { %p817_p1 = scmp.ne.s32.totalorder %s1392_s3, %s816_s6  ;;  %p820_p2 = scmp.lt.u32.totalorder %s816_s6, %s1392_s3 }
 0x17d   :  { %p822_p3 = pnand %p820_p2, %p817_p1 }
 0x17f   :  { %825 = shalt.err (!%p822_p3)
}
 0x180   :  { %709 = dma.vmem_to_hbm [thread:$0]  %s707_s29, 512, %s1392_s3, [#allocation4]  }
 0x181   :  { %830 = dma.done.wait [#allocation4], 512  }
 0x182   :  { %831 = vsyncadd [#allocation4], 4294966784 }
 0x183   :  { %713 = vsyncpa [#allocation3], 1 }
 0x184   :  { %714 = vsyncpa [#allocation6], 1 }
 0x185   :  { %715 = vsyncpa [#allocation4], 1 }

</bundles_post_ra>
